<compile_context>
chip_gen: v6e
topology: v6e:2x2x1
jax: 0.10.0
libtpu: 0.0.40
codegen_flags: <defaults>
</compile_context>

<pallas_src>
import functools
import math

import jax
import jax.numpy as jnp
from jax.experimental import pallas as pl
from jax.experimental.pallas import tpu as pltpu


def _round_up(x, n):
    return (x + n - 1) // n * n


def _arcface_kernel(label_ref, emb_ref, w_ref, out_ref, inv_wnorm_ref,
                    *, s, cos_m, sin_m, eps, compute_dtype):
    # label_ref: (tb, 1) int32   emb_ref: (tb, D) f32
    # w_ref:     (D, tc) compute_dtype (resident across the inner/batch axis)
    # out_ref:   (tb, tc) f32    inv_wnorm_ref: (1, tc) f32 VMEM scratch
    tc = out_ref.shape[1]

    # Column inverse-norms of the resident weight block: compute once per weight
    # block (i.e. at the first batch block of every class block).
    @pl.when(pl.program_id(1) == 0)
    def _():
        wf = w_ref[...].astype(jnp.float32)
        inv_wnorm_ref[...] = jax.lax.rsqrt(
            jnp.sum(wf * wf, axis=0, keepdims=True) + eps)

    emb = emb_ref[...]                                        # (tb, D) f32
    inv_rnorm = jax.lax.rsqrt(
        jnp.sum(emb * emb, axis=1, keepdims=True) + eps)      # (tb, 1)

    # MXU matmul on raw (optionally bf16) operands, f32 accumulation; normalization
    # is applied afterwards as a rank-1 scaling.
    raw = jnp.dot(emb.astype(compute_dtype), w_ref[...],
                  preferred_element_type=jnp.float32)         # (tb, tc)
    cos_t = raw * inv_rnorm * inv_wnorm_ref[...]
    cos_t = jnp.clip(cos_t, -1.0, 1.0)

    # Margin: rows with label != -1 get +m added to the angle at column == label.
    label = label_ref[...]                                    # (tb, 1) int32
    col = jax.lax.broadcasted_iota(jnp.int32, cos_t.shape, 1) \
        + pl.program_id(0) * tc                               # class axis is grid dim 0
    hit = (col == label) & (label != -1)                      # (tb, tc) bool

    # cos(theta + m) = cos(theta)*cos(m) - sin(theta)*sin(m), sin(theta) >= 0.
    sin_t = jnp.sqrt(jnp.maximum(1.0 - cos_t * cos_t, 0.0))
    cos_tm = cos_t * cos_m - sin_t * sin_m
    out_ref[...] = (jnp.float32(s) * jnp.where(hit, cos_tm, cos_t)).astype(out_ref.dtype)


def arcface_forward(embeddings, weight, label, *, s=64.0, m=0.5,
                    tb=128, tc=512, mxu_dtype=None, eps=1e-12):
    """ArcFace forward. embeddings: [B, D], weight: [D, C], label: [B] int (-1 = ignore).

    mxu_dtype: set to jnp.bfloat16 on v6e/v7x to use bf16 MXU operands (f32 accumulation).
    """
    B, D = embeddings.shape
    Dw, C = weight.shape
    assert D == Dw, (D, Dw)

    compute_dtype = jnp.float32 if mxu_dtype is None else mxu_dtype
    embeddings = embeddings.astype(jnp.float32)
    weight = weight.astype(compute_dtype)     # bf16 here also halves weight HBM traffic
    label = label.astype(jnp.int32)

    # Clamp tiles to (padded) problem size; keep TPU-friendly (8, 128) granularity.
    tb = min(tb, _round_up(B, 8))
    tc = min(tc, _round_up(C, 128))
    Bp, Cp = _round_up(B, tb), _round_up(C, tc)
    if Bp != B:
        embeddings = jnp.pad(embeddings, ((0, Bp - B), (0, 0)))
        label = jnp.pad(label, (0, Bp - B), constant_values=-1)
    if Cp != C:
        weight = jnp.pad(weight, ((0, 0), (0, Cp - C)))
    label2d = label.reshape(Bp, 1)

    # Grid: outer = class blocks (weight resident), inner = batch blocks (streamed).
    grid = (Cp // tc, Bp // tb)

    kernel = functools.partial(
        _arcface_kernel,
        s=float(s), cos_m=math.cos(m), sin_m=math.sin(m),
        eps=float(eps), compute_dtype=compute_dtype)

    # VMEM budget: double-buffered input/output blocks + col-norm scratch + headroom.
    w_bytes = jnp.dtype(compute_dtype).itemsize
    est = 2 * (D * tc * w_bytes + tb * D * 4 + tb * 4 + tb * tc * 4) + tc * 4
    vmem_limit = int(max(32 * 1024 * 1024, est + (8 << 20)))

    out = pl.pallas_call(
        kernel,
        out_shape=jax.ShapeDtypeStruct((Bp, Cp), jnp.float32),
        grid_spec=pltpu.PrefetchScalarGridSpec(
            num_scalar_prefetch=0,
            grid=grid,
            in_specs=[
                pl.BlockSpec((tb, 1), lambda j, i: (i, 0)),   # label (per batch block)
                pl.BlockSpec((tb, D), lambda j, i: (i, 0)),   # embeddings (full D)
                pl.BlockSpec((D, tc), lambda j, i: (0, j)),   # weight (resident per j)
            ],
            out_specs=pl.BlockSpec((tb, tc), lambda j, i: (i, j)),
            scratch_shapes=[pltpu.VMEM((1, tc), jnp.float32)],
        ),
        compiler_params=pltpu.CompilerParams(
            # Inner (batch) axis must run sequentially from i==0 per class block so the
            # col-norm scratch is (re)initialized; class axis stays parallel for megacore.
            dimension_semantics=("parallel", "arbitrary"),
            vmem_limit_bytes=vmem_limit),
    )(label2d, embeddings, weight)

    return out[:B, :C]


def arcface_reference(embeddings, weight, label, *, s=64.0, m=0.5):
    """Pure-JAX f32 reference matching the PyTorch module (acos/cos form)."""
    emb_n = embeddings / jnp.linalg.norm(embeddings, axis=1, keepdims=True)
    w_n = weight / jnp.linalg.norm(weight, axis=0, keepdims=True)
    cos_theta = jnp.clip(emb_n @ w_n, -1.0, 1.0)
    col = jnp.arange(weight.shape[1])[None, :]
    hit = (col == label[:, None]) & (label[:, None] != -1)
    theta = jnp.arccos(cos_theta) + jnp.where(hit, m, 0.0)
    return s * jnp.cos(theta)


if __name__ == "__main__":
    key = jax.random.PRNGKey(0)
    k_emb, k_w, k_lab = jax.random.split(key, 3)

    B, D, C = 16, 32, 384       # batch, in_features, out_features (small demo shapes)
    s, m = 64.0, 0.5

    embeddings = jax.random.normal(k_emb, (B, D), dtype=jnp.float32)
    weight = 0.01 * jax.random.normal(k_w, (D, C), dtype=jnp.float32)  # std=0.01 init
    label = jax.random.randint(k_lab, (B,), 0, C, dtype=jnp.int32)
    label = label.at[0].set(-1)     # one "ignored" row (label == -1 -> no margin)
    label = label.at[5].set(-1)

    ref = arcface_reference(embeddings, weight, label, s=s, m=m)

    # 1) Default large-tile config (tiles auto-clamped to the problem size).
    out = jax.block_until_ready(arcface_forward(embeddings, weight, label, s=s, m=m))
    assert out.shape == (B, C)
    assert jnp.allclose(out, ref, atol=2e-3, rtol=1e-3), "f32 default-tile mismatch"

    # 2) Multi-block grid: exercises weight residency, per-block col-norm scratch
    #    re-init and the global column offset.
    out_t = jax.block_until_ready(
        arcface_forward(embeddings, weight, label, s=s, m=m, tb=8, tc=128))
    assert jnp.allclose(out_t, ref, atol=2e-3, rtol=1e-3), "f32 tiled mismatch"

    # 3) Non-multiple shapes: exercises the padding path.
    out_p = jax.block_until_ready(
        arcface_forward(embeddings[:10], weight[:, :200], label[:10], s=s, m=m))
    assert jnp.allclose(out_p, ref[:10, :200], atol=2e-3, rtol=1e-3), "padded mismatch"

    # 4) bf16 MXU operands (v6e/v7x fast path), f32 accumulation — looser tolerance.
    out_bf = jax.block_until_ready(
        arcface_forward(embeddings, weight, label, s=s, m=m, mxu_dtype=jnp.bfloat16))
    assert jnp.allclose(out_bf, ref, atol=1.0, rtol=2e-2), "bf16 mismatch"

    print("KERNEL_OK")
</pallas_src>

<mosaic_0001>
module attributes {stable_mosaic.version = 11 : i64} {
  func.func @_arcface_kernel(%arg0: i32, %arg1: i32, %arg2: memref<16x1xi32, #tpu.memory_space<vmem>>, %arg3: memref<16x32xf32, #tpu.memory_space<vmem>>, %arg4: memref<32x384xf32, #tpu.memory_space<vmem>>, %arg5: memref<16x384xf32, #tpu.memory_space<vmem>>, %arg6: memref<1x384xf32, #tpu.memory_space<vmem>>) attributes {dimension_semantics = [#tpu.dimension_semantics<parallel>, #tpu.dimension_semantics<arbitrary>], iteration_bounds = array<i64: 1, 1>, scalar_prefetch = 0 : i64, scratch_operands = 1 : i64, tpu.core_type = #tpu.core_type<tc>, window_params = [{transform_indices = @transform_0, window_bounds = array<i64: 16, 1>}, {transform_indices = @transform_1, window_bounds = array<i64: 16, 32>}, {transform_indices = @transform_2, window_bounds = array<i64: 32, 384>}, {transform_indices = @transform_3, window_bounds = array<i64: 16, 384>}]} {
    %c0_i32 = arith.constant 0 : i32
    %0 = arith.cmpi eq, %arg1, %c0_i32 : i32
    %1 = arith.extui %0 : i1 to i32
    %c0_i32_0 = arith.constant 0 : i32
    %2 = arith.cmpi ne, %1, %c0_i32_0 : i32
    scf.if %2 {
      %c0_19 = arith.constant 0 : index
      %c0_20 = arith.constant 0 : index
      %47 = vector.load %arg4[%c0_19, %c0_20] : memref<32x384xf32, #tpu.memory_space<vmem>>, vector<32x384xf32>
      %48 = arith.mulf %47, %47 : vector<32x384xf32>
      %cst_21 = arith.constant dense<0.000000e+00> : vector<384xf32>
      %49 = vector.multi_reduction <add>, %48, %cst_21 [0] : vector<32x384xf32> to vector<384xf32>
      %50 = vector.shape_cast %49 : vector<384xf32> to vector<1x384xf32>
      %cst_22 = arith.constant 9.99999996E-13 : f32
      %51 = vector.broadcast %cst_22 : f32 to vector<1x384xf32>
      %52 = arith.addf %50, %51 : vector<1x384xf32>
      %53 = math.rsqrt %52 : vector<1x384xf32>
      %c0_23 = arith.constant 0 : index
      %c0_24 = arith.constant 0 : index
      %54 = vector.load %arg6[%c0_23, %c0_24] : memref<1x384xf32, #tpu.memory_space<vmem>>, vector<1x384xf32>
      tpu.vector_store %arg6[%c0_23, %c0_24], %53 {strides = array<i32>} : memref<1x384xf32, #tpu.memory_space<vmem>>, vector<1x384xf32>,
    } else {
    }
    %c0 = arith.constant 0 : index
    %c0_1 = arith.constant 0 : index
    %3 = vector.load %arg3[%c0, %c0_1] : memref<16x32xf32, #tpu.memory_space<vmem>>, vector<16x32xf32>
    %4 = arith.mulf %3, %3 : vector<16x32xf32>
    %cst = arith.constant dense<0.000000e+00> : vector<16xf32>
    %5 = vector.multi_reduction <add>, %4, %cst [1] : vector<16x32xf32> to vector<16xf32>
    %6 = vector.shape_cast %5 : vector<16xf32> to vector<16x1xf32>
    %cst_2 = arith.constant 9.99999996E-13 : f32
    %7 = vector.broadcast %cst_2 : f32 to vector<16x1xf32>
    %8 = arith.addf %6, %7 : vector<16x1xf32>
    %9 = math.rsqrt %8 : vector<16x1xf32>
    %c0_3 = arith.constant 0 : index
    %c0_4 = arith.constant 0 : index
    %10 = vector.load %arg4[%c0_3, %c0_4] : memref<32x384xf32, #tpu.memory_space<vmem>>, vector<32x384xf32>
    %cst_5 = arith.constant dense<0.000000e+00> : vector<16x384xf32>
    %11 = tpu.matmul %3, %10, %cst_5 {dimension_numbers = #tpu.dot_dimension_numbers<[1], [0], [0], [1], [0, 0, 1, 1], [], []>} : vector<16x32xf32>, vector<32x384xf32>, vector<16x384xf32> -> vector<16x384xf32>
    %12 = vector.broadcast %9 : vector<16x1xf32> to vector<16x384xf32>
    %13 = arith.mulf %11, %12 : vector<16x384xf32>
    %c0_6 = arith.constant 0 : index
    %c0_7 = arith.constant 0 : index
    %14 = vector.load %arg6[%c0_6, %c0_7] : memref<1x384xf32, #tpu.memory_space<vmem>>, vector<1x384xf32>
    %15 = vector.broadcast %14 : vector<1x384xf32> to vector<16x384xf32>
    %16 = arith.mulf %13, %15 : vector<16x384xf32>
    %cst_8 = arith.constant -1.000000e+00 : f32
    %cst_9 = arith.constant 1.000000e+00 : f32
    %17 = vector.broadcast %cst_8 : f32 to vector<16x384xf32>
    %18 = arith.maximumf %17, %16 : vector<16x384xf32>
    %19 = vector.broadcast %cst_9 : f32 to vector<16x384xf32>
    %20 = arith.minimumf %19, %18 : vector<16x384xf32>
    %c0_10 = arith.constant 0 : index
    %c0_11 = arith.constant 0 : index
    %21 = vector.load %arg2[%c0_10, %c0_11] : memref<16x1xi32, #tpu.memory_space<vmem>>, vector<16x1xi32>
    %22 = tpu.iota {dimensions = array<i32: 1>} : vector<16x384xi32>
    %c384_i32 = arith.constant 384 : i32
    %23 = arith.muli %arg0, %c384_i32 : i32
    %24 = vector.broadcast %23 : i32 to vector<16x384xi32>
    %25 = arith.addi %22, %24 : vector<16x384xi32>
    %26 = vector.broadcast %21 : vector<16x1xi32> to vector<16x384xi32>
    %27 = arith.cmpi eq, %25, %26 : vector<16x384xi32>
    %c-1_i32 = arith.constant -1 : i32
    %28 = vector.broadcast %c-1_i32 : i32 to vector<16x1xi32>
    %29 = arith.cmpi ne, %21, %28 : vector<16x1xi32>
    %30 = vector.broadcast %29 : vector<16x1xi1> to vector<16x384xi1>
    %31 = arith.andi %27, %30 : vector<16x384xi1>
    %32 = arith.mulf %20, %20 : vector<16x384xf32>
    %cst_12 = arith.constant 1.000000e+00 : f32
    %33 = vector.broadcast %cst_12 : f32 to vector<16x384xf32>
    %34 = arith.subf %33, %32 : vector<16x384xf32>
    %cst_13 = arith.constant 0.000000e+00 : f32
    %35 = vector.broadcast %cst_13 : f32 to vector<16x384xf32>
    %36 = arith.maximumf %34, %35 : vector<16x384xf32>
    %37 = math.sqrt %36 : vector<16x384xf32>
    %cst_14 = arith.constant 0.87758255 : f32
    %38 = vector.broadcast %cst_14 : f32 to vector<16x384xf32>
    %39 = arith.mulf %20, %38 : vector<16x384xf32>
    %cst_15 = arith.constant 0.47942555 : f32
    %40 = vector.broadcast %cst_15 : f32 to vector<16x384xf32>
    %41 = arith.mulf %37, %40 : vector<16x384xf32>
    %42 = arith.subf %39, %41 : vector<16x384xf32>
    %43 = arith.select %31, %42, %20 : vector<16x384xi1>, vector<16x384xf32>
    %cst_16 = arith.constant 6.400000e+01 : f32
    %44 = vector.broadcast %cst_16 : f32 to vector<16x384xf32>
    %45 = arith.mulf %44, %43 : vector<16x384xf32>
    %c0_17 = arith.constant 0 : index
    %c0_18 = arith.constant 0 : index
    %46 = vector.load %arg5[%c0_17, %c0_18] : memref<16x384xf32, #tpu.memory_space<vmem>>, vector<16x384xf32>
    tpu.vector_store %arg5[%c0_17, %c0_18], %45 {strides = array<i32>} : memref<16x384xf32, #tpu.memory_space<vmem>>, vector<16x384xf32>,
    return
  }
  func.func @transform_0(%arg0: i32, %arg1: i32) -> (i32, i32) {
    %c0_i32 = arith.constant 0 : i32
    %c0_i32_0 = arith.constant 0 : i32
    return %arg1, %c0_i32 : i32, i32
  }
  func.func @transform_1(%arg0: i32, %arg1: i32) -> (i32, i32) {
    %c0_i32 = arith.constant 0 : i32
    %c0_i32_0 = arith.constant 0 : i32
    return %arg1, %c0_i32 : i32, i32
  }
  func.func @transform_2(%arg0: i32, %arg1: i32) -> (i32, i32) {
    %c0_i32 = arith.constant 0 : i32
    %c0_i32_0 = arith.constant 0 : i32
    return %c0_i32, %arg0 : i32, i32
  }
  func.func @transform_3(%arg0: i32, %arg1: i32) -> (i32, i32) {
    %c0_i32 = arith.constant 0 : i32
    return %arg1, %arg0 : i32, i32
  }
}

</mosaic_0001>

<bundles_post_ra>
// kernel: tpu_custom_call.1
= control target key start
LH: loop header
LB: loop body
LE: loop exit
PB: predicated region body
PF: predicated region fallthrough
CT: control target
= control target key end

     0   :  { %8 = vsyncpa [#allocation4], 0  ;;  %s851_s0 = inlined_call_operand.vmem [shape: s32[16,1], index: 0, kind: input, shape index: {}]   ;;  %s852_s1 = inlined_call_operand.vmem [shape: f32[16,32], index: 1, kind: input, shape index: {}]   ;;  %s853_s2 = inlined_call_operand.hbm [shape: f32[32,384], index: 2, kind: input, shape index: {}]   ;;  %s854_s3 = inlined_call_operand.hbm [shape: f32[16,384], index: 3, kind: output, shape index: {}]  }
   0x1   :  { %9 = vsyncpa [#allocation5], 0  ;;  %s604_s12 = smov [#allocation3]  }
   0x2   :  { %s19_s13 = sshll.u32 %s604_s12, 4  ;;  %s20_s13 = int_to_ptr.vmem [resolvable:$true] %s19_s13 }
   0x3   :  { %s568_s14 = scalar_lea.vmem %s20_s13, 1536  ;;  %p573_p1 = scmp.lt.s32.totalorder %s20_s13, %s20_s13 }
   0x4   :  { %p569_p0 = scmp.ne.s32.totalorder %s20_s13, %s568_s14  ;;  %p574_p2 = scmp.lt.s32.totalorder %s568_s14, %s568_s14 }
   0x6   :  { %p575_p3 = por %p574_p2, %p573_p1 }
   0x8   :  { %p576_p4 = pnand %p575_p3, %p569_p0 }
   0xa   :  { %579 = shalt.err (!%p576_p4)
}
   0xb   :  { %s605_s15 = smov 384   ;;  %s606_s16 = smov 24  }
   0xc   :  { %25 = dma.hbm_to_vmem [thread:$0]  %s853_s2, 1536, %s20_s13, [#allocation4], %s605_s15, %s605_s15, %s606_s16  }
   0xd   :  { %600 = dma.done.wait [#allocation4], 1536  }
   0xe   :  { %601 = vsyncadd [#allocation4], 4294965760  ;;  %v607_v0 = vmov 0.0   ;;  %v608_v1 = vmov 0   ;;  %v147_v2 = vld [vmem:[#allocation3 + $0x50] sm:$0xff]  ;;  %v148_v3 = vld [vmem:[#allocation3 + $0x58] sm:$0xff] }
   0xf   :  { %219 = vmatprep.mubr.f32.mxu0 %v607_v0  ;;  %536 = vset.pattern.permute.xlu1 %v608_v1  ;;  %v146_v4 = vld [vmem:[#allocation3 + $0x48] sm:$0xff]  ;;  %v144_v5 = vld [vmem:[#allocation3 + $0x38] sm:$0xff]  ;;  %v145_v6 = vld [vmem:[#allocation3 + $0x40] sm:$0xff]  ;;  %vm126_vm0 = vcmask 261120   ;;  %v55_v35 = vmul.f32 %v147_v2, %v147_v2  ;;  %v56_v36 = vmul.f32 %v148_v3, %v148_v3 }
  0x10   :  { %537 = vset.pattern.permute.xlu0 %v608_v1  ;;  %179 = vmatprep.subr.mxu0 %v147_v2  ;;  %v143_v7 = vld [vmem:[#allocation3 + $0x30] sm:$0xff]  ;;  %v141_v8 = vld [vmem:[#allocation3 + $0x20] sm:$0xff]  ;;  %v142_v9 = vld [vmem:[#allocation3 + $0x28] sm:$0xff]  ;;  %v52_v30 = vmul.f32 %v144_v5, %v144_v5  ;;  %v53_v33 = vmul.f32 %v145_v6, %v145_v6  ;;  %v54_v34 = vmul.f32 %v146_v4, %v146_v4  ;;  %v609_v2 = vmov 1966171168  }
  0x11   :  { %518 = vmatprep.subr.mxu1 %v148_v3  ;;  %180 = vmatpush1.msra.mxu0 %v146_v4  ;;  %v140_v10 = vld [vmem:[#allocation3 + $0x18] sm:$0xff]  ;;  %v138_v11 = vld [vmem:[#allocation3 + $0x8] sm:$0xff]  ;;  %v139_v12 = vld [vmem:[#allocation3 + $0x10] sm:$0xff]  ;;  %v49_v26 = vmul.f32 %v141_v8, %v141_v8  ;;  %v50_v28 = vmul.f32 %v142_v9, %v142_v9  ;;  %v51_v29 = vmul.f32 %v143_v7, %v143_v7  ;;  %v97_v4 = vlaneseq }
  0x12   :  { %519 = vmatpush3.msra.mxu1 %v148_v3  ;;  %181 = vmatprep.subr.mxu0 %v144_v5  ;;  %v122_v13 = vld [vmem:[%s852_s1] sm:$0xff]  ;;  %v123_v16 = vld [vmem:[%s852_s1 + $0x8] sm:$0xff]  ;;  %v46_v24 = vmul.f32 %v138_v11, %v138_v11  ;;  %v48_v25 = vmul.f32 %v140_v10, %v140_v10  ;;  %v47_v27 = vmul.f32 %v139_v12, %v139_v12  ;;  %v95_v3 = vunpack.c.l.s4 %v609_v2 }
  0x13   :  { %520 = vmatprep.subr.mxu1 %v145_v6  ;;  %182 = vmatpush1.msra.mxu0 %v143_v7  ;;  %v137_v14 = vld [vmem:[#allocation3] sm:$0xff]  ;;  %v124_v15 = vmul.f32 %v122_v13, %v122_v13  ;;  %v125_v18 = vmul.f32 %v123_v16, %v123_v16  ;;  %vm119_vm3 = vcmp.lt.s32.totalorder %v97_v4, 384 }
  0x14   :  { %521 = vmatpush3.msra.mxu1 %v145_v6  ;;  %183 = vmatprep.subr.mxu0 %v141_v8  ;;  %v348_v19 = vld [vmem:[%s851_s0] sm:$0xff]  ;;  %v349_v21 = vld [vmem:[%s851_s0 + $0x8] sm:$0xff]  ;;  %v45_v23 = vmul.f32 %v137_v14, %v137_v14  ;;  %v66_v32 = vadd.f32 %v49_v26, %v46_v24  ;;  %v75_v39 = vadd.f32 %v50_v28, %v47_v27  ;;  %v96_v5 = vunpack.c.0.s8 %v95_v3  ;;  %s610_s0 = smov [#allocation6]  }
  0x15   :  { %522 = vmatprep.subr.mxu1 %v142_v9  ;;  %184 = vmatpush1.msra.mxu0 %v140_v10  ;;  %v127_v17 = vsel %vm126_vm0, %v124_v15, 0.0  ;;  %v130_v20 = vsel %vm126_vm0, %v125_v18, 0.0  ;;  %vm372_vm1 = vcmp.ne.s32.totalorder %v349_v21, 4294967295  ;;  %vm371_vm2 = vcmp.ne.s32.totalorder %v348_v19, 4294967295  ;;  %s490_s25 = sshll.u32 %s610_s0, 4  ;;  %s491_s25 = int_to_ptr.vmem [resolvable:$true] %s490_s25 }
  0x16   :  { %523 = vmatpush3.msra.mxu1 %v142_v9  ;;  %185 = vmatprep.subr.mxu0 %v138_v11  ;;  %v374_v22 = vsel %vm372_vm1, 1, %v608_v1  ;;  %v57_v31 = vadd.f32 %v48_v25, %v45_v23  ;;  %v67_v38 = vadd.f32 %v66_v32, %v52_v30  ;;  %v76_v42 = vadd.f32 %v75_v39, %v53_v33  ;;  %s580_s26 = scalar_lea.vmem %s491_s25, 768  ;;  %p585_p6 = scmp.lt.s32.totalorder %s491_s25, %s491_s25 }
  0x17   :  { %524 = vmatprep.subr.mxu1 %v139_v12  ;;  %186 = vmatpush1.msra.mxu0 %v137_v14  ;;  %v373_v46 = vsel %vm371_vm2, 1, %v608_v1  ;;  %v98_v6 = vshrl.u32 %v97_v4, 7  ;;  %p581_p5 = scmp.ne.s32.totalorder %s491_s25, %s580_s26  ;;  %p586_p7 = scmp.lt.s32.totalorder %s580_s26, %s580_s26 }
  0x18   :  { %525 = vmatpush3.msra.mxu1 %v139_v12  ;;  %526 = vmatprep.mubr.msk.f32.mxu1 %vm126_vm0, %v122_v13  ;;  %v58_v37 = vadd.f32 %v57_v31, %v51_v29  ;;  %v68_v41 = vadd.f32 %v67_v38, %v55_v35  ;;  %v77_v45 = vadd.f32 %v76_v42, %v56_v36 }
  0x19   :  { %502 = vmatmul.mubr.msk.f32.vlgmr.msra.gmra.mxu0 %vm126_vm0, %v122_v13  ;;  %527 = vmatmul.mubr.msk.f32.vlgmr.msra.gmra.mxu1 %vm126_vm0, %v123_v16  ;;  %v99_v7 = vsub.s32 %v96_v5, %v98_v6  ;;  %v321_v23 = vsub.s32 1, %v98_v6  ;;  %p587_p8 = por %p586_p7, %p585_p6 }
  0x1a   :  { %225 = vmatprep.mubr.f32.mxu0 %v607_v0  ;;  %128 = vadd.xlane.f32.xlu0 %v127_v17  ;;  %v59_v40 = vadd.f32 %v58_v37, %v54_v34  ;;  %v69_v44 = vrot.slane %v68_v41, 4  ;;  %v78_v49 = vrot.slane %v77_v45, 4 }
  0x1b   :  { %360 = vperm.xlu1 %536, %v348_v19   ;;  %p588_p9 = pnand %p587_p8, %p581_p5 }
  0x1c   :  { %v60_v43 = vrot.slane %v59_v40, 4  ;;  %v70_v48 = vadd.f32 %v69_v44, %v68_v41  ;;  %v79_v52 = vadd.f32 %v78_v49, %v77_v45 }
  0x1d   :  { %503 = vmatmul.mubr.msk.f32.gmra.mxu0 %vm126_vm0, %v123_v16 }
  0x1e   :  { %131 = vadd.xlane.f32.xlu0 %v130_v20  ;;  %v61_v47 = vadd.f32 %v60_v43, %v59_v40  ;;  %v71_v51 = vrot.slane %v70_v48, 2  ;;  %v80_v55 = vrot.slane %v79_v52, 2  ;;  %v317_v20 = vsub.s32 0, %v98_v6 }
  0x1f   :  { %363 = vperm.xlu1 %536, %v349_v21  }
  0x20   :  { %v62_v50 = vrot.slane %v61_v47, 2  ;;  %v72_v54 = vadd.f32 %v71_v51, %v70_v48  ;;  %v81_v58 = vadd.f32 %v80_v55, %v79_v52 }
  0x22   :  { %v63_v53 = vadd.f32 %v62_v50, %v61_v47  ;;  %v73_v57 = vrot.slane %v72_v54, 1  ;;  %v82_v61 = vrot.slane %v81_v58, 1 }
  0x23   :  { %379 = vperm.xlu1 %536, %v374_v22   ;;  %v325_v22 = vsub.s32 2, %v98_v6 }
  0x24   :  { %v64_v56 = vrot.slane %v63_v53, 1  ;;  %v74_v60 = vadd.f32 %v73_v57, %v72_v54  ;;  %v83_v62 = vadd.f32 %v82_v61, %v81_v58 }
  0x26   :  { %v65_v59 = vadd.f32 %v64_v56, %v63_v53  ;;  %v85_v0 = vadd.f32 1e-12, %v74_v60  ;;  %v86_v1 = vadd.f32 1e-12, %v83_v62 }
  0x28   :  { %v84_v63 = vadd.f32 1e-12, %v65_v59 }
  0x2a   :  { %538 = vrsqrt.f32 %v84_v63 }
  0x2b   :  { %540 = vrsqrt.f32 %v85_v0 }
  0x2c   :  { %542 = vrsqrt.f32 %v86_v1 }
  0x34   :  { %376 = vperm.xlu0 %537, %v373_v46  }
  0x37   :  { %v539_v8 = vpop.eup %538 }
  0x38   :  { %v541_v9 = vpop.eup %540 }
  0x39   :  { %v543_v10 = vpop.eup %542  ;;  %v93_v11 = vcombine.low %v539_v8, %v541_v9  ;;  %v704_v9 = vand.u32 127, %v97_v4 }
  0x3a   :  { %v107_v12 = vrot.slane %v543_v10, %v99_v7 }
  0x3b   :  { %v100_v13 = vrot.slane %v93_v11, %v99_v7  ;;  %v711_v11 = vadd.s32 256, %v704_v9 }
  0x3d   :  { %v108_v14 = vcombine.low %v100_v13, %v107_v12  ;;  %v716_v13 = vadd.s32 128, %v704_v9 }
  0x3f   :  { %v115_v15 = vrot.slane %v108_v14, %v99_v7 }
  0x41   :  { %121 = vst.msk [vmem:[#allocation2] sm:$0x7] %vm119_vm3, %v115_v15 }
  0x48   :  { %v313_v21 = vld [vmem:[#allocation2] sm:$0x7] }
  0x49   :  { %v318_v26 = vrot.slane %v313_v21, %v317_v20  ;;  %v326_v28 = vrot.slane %v313_v21, %v325_v22  ;;  %v322_v31 = vrot.slane %v313_v21, %v321_v23 }
  0x96   :  { %v677_v55 = vpop.permute.xlu1 %360 }
  0x97   :  { %vm365_vm4 = vcmp.eq.s32.totalorder %v704_v9, %v677_v55 }
  0x9a   :  { %v700_v7 = vpop.permute.xlu1 %363 }
  0x9b   :  { %vm370_vm6 = vcmp.eq.s32.totalorder %v711_v11, %v700_v7  ;;  %vm369_vm14 = vcmp.eq.s32.totalorder %v716_v13, %v700_v7 }
  0x9e   :  { %v718_v14 = vpop.permute.xlu1 %379 }
  0x9f   :  { %vm382_vm7 = vcmp.eq.s32.totalorder %v718_v14, 1 }
  0xa3   :  { %v129_v16 = vpop.xlane.xlu0 %128 }
  0xa4   :  { %v133_v18 = vadd.f32 1e-12, %v129_v16 }
  0xa6   :  { %544 = vrsqrt.f32 %v133_v18 }
  0xa7   :  { %v132_v17 = vpop.xlane.xlu0 %131 }
  0xa8   :  { %v134_v19 = vadd.f32 1e-12, %v132_v17 }
  0xaa   :  { %546 = vrsqrt.f32 %v134_v19 }
  0xaf   :  { %v713_v12 = vpop.permute.xlu0 %376 }
  0xb0   :  { %vm381_vm5 = vcmp.eq.s32.totalorder %v713_v12, 1 }
  0xb3   :  { %v545_v24 = vpop.eup %544 }
  0xb7   :  { %v547_v25 = vpop.eup %546 }
  0xd9   :  { %v221_v27 = vpop.f32.mrf.mxu0  ;;  %v528_v30 = vpop.f32.mrf.mxu1 }
  0xda   :  { %v307_v29 = vmul.f32 %v545_v24, %v221_v27  ;;  %v312_v32 = vmul.f32 %v547_v25, %v528_v30 }
  0xdb   :  { %v223_v33 = vpop.f32.mrf.mxu0  ;;  %v298_v36 = vpop.f32.mrf.mxu1 }
  0xdc   :  { %v330_v34 = vmul.f32 %v318_v26, %v307_v29  ;;  %v308_v35 = vmul.f32 %v545_v24, %v223_v33  ;;  %v335_v37 = vmul.f32 %v326_v28, %v312_v32  ;;  %v309_v38 = vmul.f32 %v545_v24, %v298_v36 }
  0xdd   :  { %v227_v39 = vpop.f32.mrf.mxu0 }
  0xde   :  { %v661_v40 = vclamps-f32 %v330_v34, 1.0  ;;  %v331_v41 = vmul.f32 %v322_v31, %v308_v35  ;;  %v310_v42 = vmul.f32 %v547_v25, %v227_v39  ;;  %v663_v43 = vclamps-f32 %v335_v37, 1.0 }
  0xdf   :  { %v332_v44 = vmul.f32 %v326_v28, %v309_v38  ;;  %v229_v45 = vpop.f32.mrf.mxu0 }
  0xe0   :  { %v389_v46 = vmul.f32 %v661_v40, %v661_v40  ;;  %v667_v47 = vclamps-f32 %v331_v41, 1.0  ;;  %v333_v48 = vmul.f32 %v318_v26, %v310_v42  ;;  %v394_v49 = vmul.f32 %v663_v43, %v663_v43 }
  0xe1   :  { %v671_v50 = vclamps-f32 %v332_v44, 1.0  ;;  %v311_v51 = vmul.f32 %v547_v25, %v229_v45  ;;  %v721_v15 = vmul.f32 0.87758255, %v661_v40  ;;  %v727_v4 = vmul.f32 0.87758255, %v663_v43 }
  0xe2   :  { %v395_v52 = vsub.f32 1.0, %v389_v46  ;;  %v390_v53 = vmul.f32 %v667_v47, %v667_v47  ;;  %v675_v54 = vclamps-f32 %v333_v48, 1.0  ;;  %v400_v56 = vsub.f32 1.0, %v394_v49 }
  0xe3   :  { %v391_v57 = vmul.f32 %v671_v50, %v671_v50  ;;  %v334_v58 = vmul.f32 %v322_v31, %v311_v51  ;;  %v730_v16 = vmul.f32 0.87758255, %v667_v47  ;;  %v733_v17 = vmul.f32 0.87758255, %v671_v50 }
  0xe4   :  { %v681_v59 = vmax.f32 %v395_v52, 0.0  ;;  %v396_v60 = vsub.f32 1.0, %v390_v53  ;;  %v392_v61 = vmul.f32 %v675_v54, %v675_v54  ;;  %v685_v62 = vmax.f32 %v400_v56, 0.0 }
  0xe5   :  { %v397_v63 = vsub.f32 1.0, %v391_v57  ;;  %v687_v0 = vclamps-f32 %v334_v58, 1.0  ;;  %v739_v18 = vmul.f32 0.87758255, %v675_v54 }
  0xe6   :  { %548 = vrsqrt.f32 %v681_v59  ;;  %v690_v1 = vmax.f32 %v396_v60, 0.0  ;;  %v398_v2 = vsub.f32 1.0, %v392_v61  ;;  %vm444_vm8 = vcmp.eq.f32.partialorder %v685_v62, inf }
  0xe7   :  { %550 = vrsqrt.f32 %v685_v62  ;;  %v693_v3 = vmax.f32 %v397_v63, 0.0  ;;  %v393_v5 = vmul.f32 %v687_v0, %v687_v0  ;;  %vm446_vm9 = vcmp.eq.f32.partialorder %v685_v62, 0.0 }
  0xe8   :  { %552 = vrsqrt.f32 %v690_v1  ;;  %v698_v6 = vmax.f32 %v398_v2, 0.0  ;;  %vm409_vm11 = vcmp.eq.f32.partialorder %v681_v59, inf  ;;  %v447_v20 = vand.u32 2147483648, %v685_v62 }
  0xe9   :  { %554 = vrsqrt.f32 %v693_v3  ;;  %v399_v8 = vsub.f32 1.0, %v393_v5  ;;  %vm411_vm15 = vcmp.eq.f32.partialorder %v681_v59, 0.0  ;;  %v412_v24 = vand.u32 2147483648, %v681_v59 }
  0xea   :  { %556 = vrsqrt.f32 %v698_v6  ;;  %vm430_vm12 = vcmp.eq.f32.partialorder %v698_v6, inf  ;;  %vm432_vm13 = vcmp.eq.f32.partialorder %v698_v6, 0.0  ;;  %v433_v22 = vand.u32 2147483648, %v698_v6 }
  0xeb   :  { %v707_v10 = vmax.f32 %v399_v8, 0.0  ;;  %vm416_vm1 = vcmp.eq.f32.partialorder %v690_v1, inf  ;;  %vm418_vm2 = vcmp.eq.f32.partialorder %v690_v1, 0.0  ;;  %v419_v27 = vand.u32 2147483648, %v690_v1 }
  0xec   :  { %vm423_vm3 = vcmp.eq.f32.partialorder %v693_v3, inf  ;;  %vm425_vm0 = vcmp.eq.f32.partialorder %v693_v3, 0.0  ;;  %v426_v31 = vand.u32 2147483648, %v693_v3 }
  0xed   :  { %558 = vrsqrt.f32 %v707_v10  ;;  %vm437_vm10 = vcmp.eq.f32.partialorder %v707_v10, inf  ;;  %v440_v58 = vand.u32 2147483648, %v707_v10 }
  0xf3   :  { %v549_v19 = vpop.eup %548 }
  0xf4   :  { %v551_v21 = vpop.eup %550  ;;  %v408_v23 = vmul.f32 %v549_v19, %v681_v59 }
  0xf5   :  { %v553_v25 = vpop.eup %552  ;;  %v443_v26 = vmul.f32 %v551_v21, %v685_v62 }
  0xf6   :  { %v555_v28 = vpop.eup %554  ;;  %v410_v29 = vsel %vm409_vm11, %v681_v59, %v408_v23  ;;  %v415_v30 = vmul.f32 %v553_v25, %v690_v1  ;;  %vm439_vm11 = vcmp.eq.f32.partialorder %v707_v10, 0.0 }
  0xf7   :  { %v557_v32 = vpop.eup %556  ;;  %v445_v33 = vsel %vm444_vm8, %v685_v62, %v443_v26  ;;  %v413_v34 = vsel %vm411_vm15, %v412_v24, %v410_v29  ;;  %v422_v35 = vmul.f32 %v555_v28, %v693_v3  ;;  %vm383_vm8 = vmand %vm365_vm4, %vm381_vm5  ;;  %vm855_vm4 = vcmp.eq.s32.totalorder %v716_v13, %v677_v55 }
  0xf8   :  { %v429_v36 = vmul.f32 %v557_v32, %v698_v6  ;;  %v448_v37 = vsel %vm446_vm9, %v447_v20, %v445_v33  ;;  %v417_v38 = vsel %vm416_vm1, %v690_v1, %v415_v30  ;;  %v455_v39 = vmul.f32 0.47942555, %v413_v34  ;;  %vm388_vm9 = vmand %vm370_vm6, %vm382_vm7 }
  0xf9   :  { %v460_v41 = vmul.f32 0.47942555, %v448_v37  ;;  %v420_v42 = vsel %vm418_vm2, %v419_v27, %v417_v38  ;;  %v424_v44 = vsel %vm423_vm3, %v693_v3, %v422_v35  ;;  %vm856_vm6 = vcmp.eq.s32.totalorder %v711_v11, %v677_v55 }
  0xfa   :  { %v559_v45 = vpop.eup %558  ;;  %v431_v46 = vsel %vm430_vm12, %v698_v6, %v429_v36  ;;  %v427_v48 = vsel %vm425_vm0, %v426_v31, %v424_v44  ;;  %v456_v49 = vmul.f32 0.47942555, %v420_v42  ;;  %v461_v51 = vsub.f32 %v721_v15, %v455_v39  ;;  %vm384_vm12 = vmand %vm855_vm4, %vm381_vm5 }
  0xfb   :  { %v434_v52 = vsel %vm432_vm13, %v433_v22, %v431_v46  ;;  %v436_v53 = vmul.f32 %v559_v45, %v707_v10  ;;  %v466_v56 = vsub.f32 %v727_v4, %v460_v41  ;;  %v457_v57 = vmul.f32 0.47942555, %v427_v48 }
  0xfc   :  { %v458_v59 = vmul.f32 0.47942555, %v434_v52  ;;  %v462_v60 = vsub.f32 %v730_v16, %v456_v49  ;;  %v467_v61 = vsel %vm383_vm8, %v461_v51, %v661_v40  ;;  %v453_v6 = vmul.f32 0.87758255, %v687_v0 }
  0xfd   :  { %v438_v62 = vsel %vm437_vm10, %v707_v10, %v436_v53  ;;  %v472_v63 = vsel %vm388_vm9, %v466_v56, %v663_v43  ;;  %v463_v1 = vsub.f32 %v733_v17, %v457_v57  ;;  %v473_v2 = vmul.f32 64.0, %v467_v61  ;;  %vm385_vm10 = vmand %vm856_vm6, %vm381_vm5 }
  0xfe   :  { %v441_v3 = vsel %vm439_vm11, %v440_v58, %v438_v62  ;;  %v464_v40 = vsub.f32 %v739_v18, %v458_v59  ;;  %v478_v5 = vmul.f32 64.0, %v472_v63  ;;  %v468_v43 = vsel %vm384_vm12, %v462_v60, %v667_v47  ;;  %vm387_vm5 = vmand %vm369_vm14, %vm382_vm7 }
  0xff   :  { %vm857_vm13 = vcmp.eq.s32.totalorder %v704_v9, %v700_v7  ;;  %v459_v8 = vmul.f32 0.47942555, %v441_v3  ;;  %v469_v10 = vsel %vm385_vm10, %v463_v1, %v671_v50  ;;  %v474_v15 = vmul.f32 64.0, %v468_v43  ;;  %479 = vst [vmem:[#allocation6] sm:$0xff] %v473_v2 }
 0x100   :  { %vm386_vm15 = vmand %vm857_vm13, %vm382_vm7  ;;  %484 = vst [vmem:[#allocation6 + $0x28] sm:$0xff] %v478_v5  ;;  %v475_v55 = vmul.f32 64.0, %v469_v10 }
 0x101   :  { %v470_v12 = vsel %vm386_vm15, %v464_v40, %v675_v54  ;;  %v465_v11 = vsub.f32 %v453_v6, %v459_v8  ;;  %480 = vst [vmem:[#allocation6 + $0x8] sm:$0xff] %v474_v15 }
 0x102   :  { %v476_v4 = vmul.f32 64.0, %v470_v12  ;;  %481 = vst [vmem:[#allocation6 + $0x10] sm:$0xff] %v475_v55 }
 0x103   :  { %v471_v47 = vsel %vm387_vm5, %v465_v11, %v687_v0 }
 0x104   :  { %482 = vst [vmem:[#allocation6 + $0x18] sm:$0xff] %v476_v4  ;;  %v477_v50 = vmul.f32 64.0, %v471_v47 }
 0x106   :  { %483 = vst [vmem:[#allocation6 + $0x20] sm:$0xff] %v477_v50 }
 0x107   :  { %591 = shalt.err (!%p588_p9)
}
 0x108   :  { %496 = dma.vmem_to_hbm [thread:$0]  %s491_s25, 768, %s854_s3, [#allocation5], %s605_s15, %s605_s15, %s606_s16  }
 0x109   :  { %602 = dma.done.wait [#allocation5], 768  }
 0x10a   :  { %603 = vsyncadd [#allocation5], 4294966528 }
 0x10b   :  { %500 = vsyncpa [#allocation4], 1 }
 0x10c   :  { %501 = vsyncpa [#allocation5], 1 }

</bundles_post_ra>
